<compile_context>
chip_gen: v7x
topology: tpu7x:2x2x1
jax: 0.10.0
libtpu: 0.0.40
codegen_flags: <defaults>
</compile_context>

<pallas_src>
import functools

import jax
import jax.numpy as jnp
import numpy as np
from jax import lax
from jax.experimental import pallas as pl
from jax.experimental.pallas import tpu as pltpu


def _round_up(v, m):
    return ((v + m - 1) // m) * m


def choose_tiles(num_nodes, itemsize, target_tile_bytes=2 << 20):
    """Pick (tm, tk, n_pad): row tile, K tile (~2 MiB A_hat DMA blocks), padded N."""
    n128 = _round_up(max(num_nodes, 1), 128)
    tm = min(256, n128)
    raw_tk = max(tm, target_tile_bytes // (tm * itemsize))
    tk = min(_round_up(raw_tk, tm), _round_up(n128, tm))   # tk is a multiple of tm
    n_pad = _round_up(n128, tk)
    return tm, tk, n_pad


def nonzero_tile_schedule(edge_index_np, num_nodes, tm, tk):
    """Host-side sorted list of nonzero (row-tile, col-tile) blocks of A_hat plus
    first/last-in-row flags.  Self-loops guarantee every real row tile appears;
    fully-padded row tiles may be absent, which is correct because their M_pool
    columns are zero (they contribute nothing to the pooled accumulator)."""
    src = np.asarray(edge_index_np[0])
    dst = np.asarray(edge_index_np[1])
    loops = np.arange(num_nodes)
    rows = np.concatenate([dst, loops])          # A_hat[dst, src] + self loops
    cols = np.concatenate([src, loops])
    pairs = np.unique(np.stack([rows // tm, cols // tk], axis=1), axis=0)
    tr = pairs[:, 0].astype(np.int32)
    tc = pairs[:, 1].astype(np.int32)
    first = np.ones_like(tr)
    last = np.ones_like(tr)
    first[1:] = (tr[1:] != tr[:-1]).astype(np.int32)
    last[:-1] = (tr[1:] != tr[:-1]).astype(np.int32)
    return (jnp.asarray(tr), jnp.asarray(tc),
            jnp.asarray(first), jnp.asarray(last))


# ----------------------------- fused kernel -------------------------------- #
# 1-D grid over the nonzero A_hat tiles (sorted by (row, col)):
#   first-in-row : acc[tm, 4*hid] = 0
#   every step   : acc += A_hat[tr, tc] @ xw4[tc]        (bf16 in, f32 acc)
#   last-in-row  : h = acc + b4 ; per-lane relu select ;
#                  pooled[G, 4*hid] += M[:, tr] @ h_cat
#   last step    : out = log_softmax(pooled @ W_fc + b_fc)
def _bigcn_fused_kernel(tr_ref, tc_ref, first_ref, last_ref,          # prefetch
                        a_ref, xw4_ref, b4_ref, m_ref, wfc_ref, bfc_ref,
                        out_ref, acc_ref, pooled_ref, *, hid, tk):
    t = pl.program_id(0)

    @pl.when(t == 0)
    def _():
        pooled_ref[...] = jnp.zeros_like(pooled_ref)

    @pl.when(first_ref[t] == 1)
    def _():
        acc_ref[...] = jnp.zeros_like(acc_ref)

    # Shared TD/BU aggregation, lane-dense 4*hid-wide accumulator.
    k_start = pl.multiple_of(tc_ref[t] * tk, tk)
    acc_ref[...] += jnp.dot(a_ref[...], xw4_ref[pl.ds(k_start, tk), :],
                            preferred_element_type=jnp.float32)

    @pl.when(last_ref[t] == 1)
    def _():
        h = acc_ref[...] + b4_ref[...]                       # f32 elementwise
        lane = lax.broadcasted_iota(jnp.int32, h.shape, 1)
        relu_lane = (lane < hid) | ((lane >= 2 * hid) & (lane < 3 * hid))
        h_cat = jnp.where(relu_lane, jnp.maximum(h, 0.0), h)
        # mean-pool partial for this row tile (padded node columns of M are 0)
        pooled_ref[...] += jnp.dot(m_ref[...], h_cat,
                                   preferred_element_type=jnp.float32)

    @pl.when(t == pl.num_programs(0) - 1)
    def _():
        logits = jnp.dot(pooled_ref[...], wfc_ref[...],
                         preferred_element_type=jnp.float32) + bfc_ref[...]
        mx = jnp.max(logits, axis=1, keepdims=True)
        lse = mx + jnp.log(jnp.sum(jnp.exp(logits - mx), axis=1, keepdims=True))
        out_ref[...] = logits - lse


# ------------------------------- wrapper ------------------------------------ #
def bigcn_forward_pallas(x, a_hat_p, m_pool_p, params, schedule, *, tm, tk,
                         compute_dtype=jnp.bfloat16):
    """a_hat_p: [n_pad, n_pad] (already padded, already compute_dtype);
       m_pool_p: [G, n_pad] f32 (padded columns zero); schedule from
       nonzero_tile_schedule."""
    n_pad = a_hat_p.shape[0]
    g = m_pool_p.shape[0]
    n, _ = x.shape
    hid = params["w_td"].shape[1]
    width = 4 * hid
    out_feats = params["b_fc"].shape[-1]
    assert n_pad % tm == 0 and n_pad % tk == 0

    tr, tc, rf, rl = schedule
    num_tiles = int(tr.shape[0])
    num_row_tiles = n_pad // tm
    itemsize = jnp.dtype(compute_dtype).itemsize

    # xw4 = x @ [w_td | w_td | w_bu | w_bu]  -> lane-dense [n_pad, 4*hid]
    w4 = jnp.concatenate([params["w_td"], params["w_td"],
                          params["w_bu"], params["w_bu"]], axis=1)
    b4 = jnp.concatenate([params["b_td"], params["b_td"],
                          params["b_bu"], params["b_bu"]], axis=1)      # f32 [1, 4H]
    xw4 = jnp.zeros((n_pad, width), compute_dtype).at[:n].set(
        (x @ w4).astype(compute_dtype))
    a_p = a_hat_p.astype(compute_dtype)                                  # no-op if prebuilt

    # VMEM budget (v7x has only 64 MiB/TC): streamed A tiles + resident xw4 +
    # accumulators + small resident operands, with headroom.
    vmem_need = (3 * tm * tk * itemsize                 # A_hat tiles (pipelined)
                 + n_pad * width * itemsize             # resident xw4
                 + (tm + g) * width * 4                 # acc + pooled scratch
                 + 2 * g * tm * 4                       # M tiles
                 + (width + 2) * (width + out_feats) * 4)
    vmem_limit = int(min(64 << 20, max(16 << 20, 2 * vmem_need)))

    flops = int(2 * num_tiles * tm * tk * width
                + 2 * num_row_tiles * g * tm * width
                + 2 * g * width * out_feats)
    bytes_accessed = int(num_tiles * tm * tk * itemsize      # A_hat nonzero tiles
                         + n_pad * width * itemsize          # xw4 (read once)
                         + num_row_tiles * g * tm * 4        # M tiles
                         + width * out_feats * 4 + (width + out_feats + g * out_feats) * 4)

    grid_spec = pltpu.PrefetchScalarGridSpec(
        num_scalar_prefetch=4,
        grid=(num_tiles,),
        in_specs=[
            pl.BlockSpec((tm, tk), lambda t, tr, tc, rf, rl: (tr[t], tc[t])),   # A_hat tile
            pl.BlockSpec((n_pad, width), lambda t, tr, tc, rf, rl: (0, 0)),     # xw4 resident
            pl.BlockSpec((1, width), lambda t, tr, tc, rf, rl: (0, 0)),         # b4 resident
            pl.BlockSpec((g, tm), lambda t, tr, tc, rf, rl: (0, tr[t])),        # M row-tile
            pl.BlockSpec((width, out_feats), lambda t, tr, tc, rf, rl: (0, 0)), # W_fc resident
            pl.BlockSpec((1, out_feats), lambda t, tr, tc, rf, rl: (0, 0)),     # b_fc resident
        ],
        out_specs=pl.BlockSpec((g, out_feats), lambda t, tr, tc, rf, rl: (0, 0)),
        scratch_shapes=[pltpu.VMEM((tm, width), jnp.float32),   # acc
                        pltpu.VMEM((g, width), jnp.float32)],   # pooled
    )

    out = pl.pallas_call(
        functools.partial(_bigcn_fused_kernel, hid=hid, tk=tk),
        out_shape=jax.ShapeDtypeStruct((g, out_feats), jnp.float32),
        grid_spec=grid_spec,
        compiler_params=pltpu.CompilerParams(
            dimension_semantics=("arbitrary",),
            vmem_limit_bytes=vmem_limit),
        cost_estimate=pl.CostEstimate(flops=flops,
                                      transcendentals=int(2 * g * out_feats),
                                      bytes_accessed=bytes_accessed),
    )(tr, tc, rf, rl, a_p, xw4, b4, m_pool_p, params["w_fc_full"], params["b_fc"])
    return out


# ----------------------------- plain-JAX glue ------------------------------- #
def build_gcn_adjacency(edge_index, num_nodes, n_pad, dtype=jnp.float32):
    """Dense D^{-1/2}(A+I)D^{-1/2}, A_hat[dst, src] = norm (PyG convention),
    built directly at padded size and target dtype (padded rows/cols are 0)."""
    src = edge_index[0]
    dst = edge_index[1]
    loops = jnp.arange(num_nodes, dtype=src.dtype)
    row = jnp.concatenate([src, loops])   # message source
    col = jnp.concatenate([dst, loops])   # message destination
    deg = jnp.zeros((num_nodes,), jnp.float32).at[col].add(1.0)
    dinv = jnp.where(deg > 0, 1.0 / jnp.sqrt(deg), 0.0)
    norm = dinv[row] * dinv[col]
    return jnp.zeros((n_pad, n_pad), dtype).at[col, row].add(norm.astype(dtype))


def build_mean_pool(batch, num_graphs, n_pad):
    n = batch.shape[0]
    onehot = jnp.zeros((num_graphs, n_pad), jnp.float32).at[
        batch, jnp.arange(n)].set(1.0)
    counts = jnp.clip(onehot.sum(axis=1, keepdims=True), 1.0, None)
    return onehot / counts   # [G, n_pad], padded columns are zero


def init_params(key, in_feats, hid_feats, out_feats):
    ks = jax.random.split(key, 6)
    w_td = jax.random.normal(ks[0], (in_feats, hid_feats), jnp.float32) * 0.1
    w_bu = jax.random.normal(ks[1], (in_feats, hid_feats), jnp.float32) * 0.1
    b_td = jax.random.normal(ks[2], (1, hid_feats), jnp.float32) * 0.1
    b_bu = jax.random.normal(ks[3], (1, hid_feats), jnp.float32) * 0.1
    w_fc = jax.random.normal(ks[4], (4 * hid_feats, out_feats), jnp.float32) * 0.1
    b_fc = jax.random.normal(ks[5], (1, out_feats), jnp.float32) * 0.1
    return {"w_td": w_td, "b_td": b_td, "w_bu": w_bu, "b_bu": b_bu,
            "w_fc_full": w_fc, "b_fc": b_fc}


def bigcn_forward_ref(x, a_hat, m_pool, params):
    """Pure-JAX reference mirroring the PyTorch module exactly (f32, unpadded)."""
    h_td = a_hat @ (x @ params["w_td"]) + params["b_td"]
    h_bu = a_hat @ (x @ params["w_bu"]) + params["b_bu"]
    td_cat = jnp.concatenate([jax.nn.relu(h_td), h_td], axis=1)
    bu_cat = jnp.concatenate([jax.nn.relu(h_bu), h_bu], axis=1)
    xcat = jnp.concatenate([td_cat, bu_cat], axis=1)           # [N, 4*hid]
    pooled = m_pool @ xcat                                      # scatter_mean
    logits = pooled @ params["w_fc_full"] + params["b_fc"]
    return jax.nn.log_softmax(logits, axis=1)


def run_case(x, edge_index_np, batch_np, num_graphs, params, compute_dtype,
             tm, tk, rtol, atol):
    num_nodes = x.shape[0]
    itemsize = jnp.dtype(compute_dtype).itemsize
    if tm is None:
        tm, tk, n_pad = choose_tiles(num_nodes, itemsize)
    else:
        n_pad = _round_up(num_nodes, max(tm, tk))
    edge_index = jnp.asarray(edge_index_np)
    batch = jnp.asarray(batch_np)

    a_hat_p = build_gcn_adjacency(edge_index, num_nodes, n_pad, compute_dtype)
    m_pool_p = build_mean_pool(batch, num_graphs, n_pad)
    schedule = nonzero_tile_schedule(edge_index_np, num_nodes, tm, tk)

    out = bigcn_forward_pallas(x, a_hat_p, m_pool_p, params, schedule,
                               tm=tm, tk=tk, compute_dtype=compute_dtype)
    out = jax.block_until_ready(out)

    a_hat_ref = build_gcn_adjacency(edge_index, num_nodes, num_nodes, jnp.float32)
    m_pool_ref = build_mean_pool(batch, num_graphs, num_nodes)
    ref = bigcn_forward_ref(x, a_hat_ref, m_pool_ref, params)
    np.testing.assert_allclose(np.asarray(out), np.asarray(ref),
                               rtol=rtol, atol=atol)


# ---------------------------------- main ------------------------------------ #
if __name__ == "__main__":
    in_feats, hid_feats, out_feats = 8, 32, 4
    key = jax.random.PRNGKey(0)
    k_x1, k_x2, k_p = jax.random.split(key, 3)
    params = init_params(k_p, in_feats, hid_feats, out_feats)

    # case 1: two small propagation trees (7 edges each), 16 nodes, 2 graphs
    tree = np.array([[0, 0, 1, 1, 2, 2, 3],
                     [1, 2, 3, 4, 5, 6, 7]], dtype=np.int32)
    ei1 = np.concatenate([tree, tree + 8], axis=1)                  # [2, 14]
    batch1 = np.array([0] * 8 + [1] * 8, dtype=np.int32)            # [16]
    x1 = jax.random.normal(k_x1, (16, in_feats), jnp.float32)
    run_case(x1, ei1, batch1, 2, params, jnp.float32, None, None, 1e-5, 1e-5)
    run_case(x1, ei1, batch1, 2, params, jnp.bfloat16, None, None, 5e-2, 5e-2)

    # case 2: two chain graphs spanning tile boundaries (384 nodes, tm=tk=128)
    # -> exercises multi-k accumulation, per-row first/last flags and skipping
    #    of all-zero A_hat tiles (5 of 9 tiles are nonzero).
    chain = np.stack([np.arange(191), np.arange(1, 192)]).astype(np.int32)
    ei2 = np.concatenate([chain, chain + 192], axis=1)
    batch2 = np.array([0] * 192 + [1] * 192, dtype=np.int32)
    x2 = jax.random.normal(k_x2, (384, in_feats), jnp.float32)
    run_case(x2, ei2, batch2, 2, params, jnp.float32, 128, 128, 1e-5, 1e-5)

    print("KERNEL_OK")
</pallas_src>

<mosaic_0001>
module attributes {stable_mosaic.version = 11 : i64} {
  func.func @_bigcn_fused_kernel(%arg0: i32, %arg1: memref<1xi32, #tpu.memory_space<smem>>, %arg2: memref<1xi32, #tpu.memory_space<smem>>, %arg3: memref<1xi32, #tpu.memory_space<smem>>, %arg4: memref<1xi32, #tpu.memory_space<smem>>, %arg5: memref<128x128xf32, #tpu.memory_space<vmem>>, %arg6: memref<128x128xf32, #tpu.memory_space<vmem>>, %arg7: memref<1x128xf32, #tpu.memory_space<vmem>>, %arg8: memref<2x128xf32, #tpu.memory_space<vmem>>, %arg9: memref<128x4xf32, #tpu.memory_space<vmem>>, %arg10: memref<1x4xf32, #tpu.memory_space<vmem>>, %arg11: memref<2x4xf32, #tpu.memory_space<vmem>>, %arg12: memref<128x128xf32, #tpu.memory_space<vmem>>, %arg13: memref<2x128xf32, #tpu.memory_space<vmem>>) attributes {dimension_semantics = [#tpu.dimension_semantics<arbitrary>], iteration_bounds = array<i64: 1>, scalar_prefetch = 4 : i64, scratch_operands = 2 : i64, tpu.core_type = #tpu.core_type<tc>, window_params = [{transform_indices = @transform_0, window_bounds = array<i64: 128, 128>}, {pipeline_mode = #tpu.pipeline_mode<synchronous>, transform_indices = @transform_1, window_bounds = array<i64: 128, 128>}, {pipeline_mode = #tpu.pipeline_mode<synchronous>, transform_indices = @transform_2, window_bounds = array<i64: 1, 128>}, {transform_indices = @transform_3, window_bounds = array<i64: 2, 128>}, {pipeline_mode = #tpu.pipeline_mode<synchronous>, transform_indices = @transform_4, window_bounds = array<i64: 128, 4>}, {pipeline_mode = #tpu.pipeline_mode<synchronous>, transform_indices = @transform_5, window_bounds = array<i64: 1, 4>}, {pipeline_mode = #tpu.pipeline_mode<synchronous>, transform_indices = @transform_6, window_bounds = array<i64: 2, 4>}]} {
    %c0_i32 = arith.constant 0 : i32
    %0 = arith.cmpi eq, %arg0, %c0_i32 : i32
    %1 = arith.extui %0 : i1 to i32
    %c0_i32_0 = arith.constant 0 : i32
    %2 = arith.cmpi ne, %1, %c0_i32_0 : i32
    scf.if %2 {
      %cst_12 = arith.constant 0.000000e+00 : f32
      %27 = vector.broadcast %cst_12 : f32 to vector<2x128xf32>
      %c0_13 = arith.constant 0 : index
      %c0_14 = arith.constant 0 : index
      %28 = vector.load %arg13[%c0_13, %c0_14] : memref<2x128xf32, #tpu.memory_space<vmem>>, vector<2x128xf32>
      tpu.vector_store %arg13[%c0_13, %c0_14], %27 {strides = array<i32>} : memref<2x128xf32, #tpu.memory_space<vmem>>, vector<2x128xf32>,
    } else {
    }
    %3 = arith.index_cast %arg0 : i32 to index
    %4 = memref.load %arg3[%3] : memref<1xi32, #tpu.memory_space<smem>>
    %c1_i32 = arith.constant 1 : i32
    %5 = arith.cmpi eq, %4, %c1_i32 : i32
    %6 = arith.extui %5 : i1 to i32
    %c0_i32_1 = arith.constant 0 : i32
    %7 = arith.cmpi ne, %6, %c0_i32_1 : i32
    scf.if %7 {
      %cst_12 = arith.constant 0.000000e+00 : f32
      %27 = vector.broadcast %cst_12 : f32 to vector<128x128xf32>
      %c0_13 = arith.constant 0 : index
      %c0_14 = arith.constant 0 : index
      %28 = vector.load %arg12[%c0_13, %c0_14] : memref<128x128xf32, #tpu.memory_space<vmem>>, vector<128x128xf32>
      tpu.vector_store %arg12[%c0_13, %c0_14], %27 {strides = array<i32>} : memref<128x128xf32, #tpu.memory_space<vmem>>, vector<128x128xf32>,
    } else {
    }
    %8 = arith.index_cast %arg0 : i32 to index
    %9 = memref.load %arg2[%8] : memref<1xi32, #tpu.memory_space<smem>>
    %c128_i32 = arith.constant 128 : i32
    %10 = arith.muli %9, %c128_i32 : i32
    %11 = tpu.assume_multiple %10, 128 : i32
    %c0 = arith.constant 0 : index
    %c0_2 = arith.constant 0 : index
    %12 = vector.load %arg12[%c0, %c0_2] : memref<128x128xf32, #tpu.memory_space<vmem>>, vector<128x128xf32>
    %c0_3 = arith.constant 0 : index
    %c0_4 = arith.constant 0 : index
    %13 = vector.load %arg5[%c0_3, %c0_4] : memref<128x128xf32, #tpu.memory_space<vmem>>, vector<128x128xf32>
    %14 = arith.index_cast %11 : i32 to index
    %c0_5 = arith.constant 0 : index
    %15 = vector.load %arg6[%14, %c0_5] : memref<128x128xf32, #tpu.memory_space<vmem>>, vector<128x128xf32>
    %cst = arith.constant dense<0.000000e+00> : vector<128x128xf32>
    %16 = tpu.matmul %13, %15, %cst {dimension_numbers = #tpu.dot_dimension_numbers<[1], [0], [0], [1], [0, 0, 1, 1], [], []>} : vector<128x128xf32>, vector<128x128xf32>, vector<128x128xf32> -> vector<128x128xf32>
    %17 = arith.addf %12, %16 : vector<128x128xf32>
    %c0_6 = arith.constant 0 : index
    %c0_7 = arith.constant 0 : index
    %18 = vector.load %arg12[%c0_6, %c0_7] : memref<128x128xf32, #tpu.memory_space<vmem>>, vector<128x128xf32>
    tpu.vector_store %arg12[%c0_6, %c0_7], %17 {strides = array<i32>} : memref<128x128xf32, #tpu.memory_space<vmem>>, vector<128x128xf32>,
    %19 = arith.index_cast %arg0 : i32 to index
    %20 = memref.load %arg4[%19] : memref<1xi32, #tpu.memory_space<smem>>
    %c1_i32_8 = arith.constant 1 : i32
    %21 = arith.cmpi eq, %20, %c1_i32_8 : i32
    %22 = arith.extui %21 : i1 to i32
    %c0_i32_9 = arith.constant 0 : i32
    %23 = arith.cmpi ne, %22, %c0_i32_9 : i32
    scf.if %23 {
      %c0_12 = arith.constant 0 : index
      %c0_13 = arith.constant 0 : index
      %27 = vector.load %arg12[%c0_12, %c0_13] : memref<128x128xf32, #tpu.memory_space<vmem>>, vector<128x128xf32>
      %c0_14 = arith.constant 0 : index
      %c0_15 = arith.constant 0 : index
      %28 = vector.load %arg7[%c0_14, %c0_15] : memref<1x128xf32, #tpu.memory_space<vmem>>, vector<1x128xf32>
      %29 = vector.broadcast %28 : vector<1x128xf32> to vector<128x128xf32>
      %30 = arith.addf %27, %29 : vector<128x128xf32>
      %31 = tpu.iota {dimensions = array<i32: 1>} : vector<128x128xi32>
      %c32_i32 = arith.constant 32 : i32
      %32 = vector.broadcast %c32_i32 : i32 to vector<128x128xi32>
      %33 = arith.cmpi slt, %31, %32 : vector<128x128xi32>
      %c64_i32 = arith.constant 64 : i32
      %34 = vector.broadcast %c64_i32 : i32 to vector<128x128xi32>
      %35 = arith.cmpi sge, %31, %34 : vector<128x128xi32>
      %c96_i32 = arith.constant 96 : i32
      %36 = vector.broadcast %c96_i32 : i32 to vector<128x128xi32>
      %37 = arith.cmpi slt, %31, %36 : vector<128x128xi32>
      %38 = arith.andi %35, %37 : vector<128x128xi1>
      %39 = arith.ori %33, %38 : vector<128x128xi1>
      %cst_16 = arith.constant 0.000000e+00 : f32
      %40 = vector.broadcast %cst_16 : f32 to vector<128x128xf32>
      %41 = arith.maximumf %30, %40 : vector<128x128xf32>
      %42 = arith.select %39, %41, %30 : vector<128x128xi1>, vector<128x128xf32>
      %c0_17 = arith.constant 0 : index
      %c0_18 = arith.constant 0 : index
      %43 = vector.load %arg13[%c0_17, %c0_18] : memref<2x128xf32, #tpu.memory_space<vmem>>, vector<2x128xf32>
      %c0_19 = arith.constant 0 : index
      %c0_20 = arith.constant 0 : index
      %44 = vector.load %arg8[%c0_19, %c0_20] : memref<2x128xf32, #tpu.memory_space<vmem>>, vector<2x128xf32>
      %cst_21 = arith.constant dense<0.000000e+00> : vector<2x128xf32>
      %45 = tpu.matmul %44, %42, %cst_21 {dimension_numbers = #tpu.dot_dimension_numbers<[1], [0], [0], [1], [0, 0, 1, 1], [], []>} : vector<2x128xf32>, vector<128x128xf32>, vector<2x128xf32> -> vector<2x128xf32>
      %46 = arith.addf %43, %45 : vector<2x128xf32>
      %c0_22 = arith.constant 0 : index
      %c0_23 = arith.constant 0 : index
      %47 = vector.load %arg13[%c0_22, %c0_23] : memref<2x128xf32, #tpu.memory_space<vmem>>, vector<2x128xf32>
      tpu.vector_store %arg13[%c0_22, %c0_23], %46 {strides = array<i32>} : memref<2x128xf32, #tpu.memory_space<vmem>>, vector<2x128xf32>,
    } else {
    }
    %c0_i32_10 = arith.constant 0 : i32
    %24 = arith.cmpi eq, %arg0, %c0_i32_10 : i32
    %25 = arith.extui %24 : i1 to i32
    %c0_i32_11 = arith.constant 0 : i32
    %26 = arith.cmpi ne, %25, %c0_i32_11 : i32
    scf.if %26 {
      %c0_12 = arith.constant 0 : index
      %c0_13 = arith.constant 0 : index
      %27 = vector.load %arg13[%c0_12, %c0_13] : memref<2x128xf32, #tpu.memory_space<vmem>>, vector<2x128xf32>
      %c0_14 = arith.constant 0 : index
      %c0_15 = arith.constant 0 : index
      %28 = vector.load %arg9[%c0_14, %c0_15] : memref<128x4xf32, #tpu.memory_space<vmem>>, vector<128x4xf32>
      %cst_16 = arith.constant dense<0.000000e+00> : vector<2x4xf32>
      %29 = tpu.matmul %27, %28, %cst_16 {dimension_numbers = #tpu.dot_dimension_numbers<[1], [0], [0], [1], [0, 0, 1, 1], [], []>} : vector<2x128xf32>, vector<128x4xf32>, vector<2x4xf32> -> vector<2x4xf32>
      %c0_17 = arith.constant 0 : index
      %c0_18 = arith.constant 0 : index
      %30 = vector.load %arg10[%c0_17, %c0_18] : memref<1x4xf32, #tpu.memory_space<vmem>>, vector<1x4xf32>
      %31 = vector.broadcast %30 : vector<1x4xf32> to vector<2x4xf32>
      %32 = arith.addf %29, %31 : vector<2x4xf32>
      %cst_19 = arith.constant dense<0xFF800000> : vector<2xf32>
      %33 = vector.multi_reduction <maximumf>, %32, %cst_19 [1] : vector<2x4xf32> to vector<2xf32>
      %34 = vector.shape_cast %33 : vector<2xf32> to vector<2x1xf32>
      %35 = vector.broadcast %34 : vector<2x1xf32> to vector<2x4xf32>
      %36 = arith.subf %32, %35 : vector<2x4xf32>
      %37 = math.exp %36 : vector<2x4xf32>
      %cst_20 = arith.constant dense<0.000000e+00> : vector<2xf32>
      %38 = vector.multi_reduction <add>, %37, %cst_20 [1] : vector<2x4xf32> to vector<2xf32>
      %39 = vector.shape_cast %38 : vector<2xf32> to vector<2x1xf32>
      %40 = math.log %39 : vector<2x1xf32>
      %41 = arith.addf %34, %40 : vector<2x1xf32>
      %42 = vector.broadcast %41 : vector<2x1xf32> to vector<2x4xf32>
      %43 = arith.subf %32, %42 : vector<2x4xf32>
      %c0_21 = arith.constant 0 : index
      %c0_22 = arith.constant 0 : index
      %44 = vector.load %arg11[%c0_21, %c0_22] : memref<2x4xf32, #tpu.memory_space<vmem>>, vector<2x4xf32>
      tpu.vector_store %arg11[%c0_21, %c0_22], %43 {strides = array<i32>} : memref<2x4xf32, #tpu.memory_space<vmem>>, vector<2x4xf32>,
    } else {
    }
    return
  }
  func.func @transform_0(%arg0: i32, %arg1: memref<1xi32, #tpu.memory_space<smem>>, %arg2: memref<1xi32, #tpu.memory_space<smem>>, %arg3: memref<1xi32, #tpu.memory_space<smem>>, %arg4: memref<1xi32, #tpu.memory_space<smem>>) -> (i32, i32) {
    %0 = arith.index_cast %arg0 : i32 to index
    %1 = memref.load %arg1[%0] : memref<1xi32, #tpu.memory_space<smem>>
    %2 = arith.index_cast %arg0 : i32 to index
    %3 = memref.load %arg2[%2] : memref<1xi32, #tpu.memory_space<smem>>
    %c0_i32 = arith.constant 0 : i32
    return %1, %3 : i32, i32
  }
  func.func @transform_1(%arg0: i32, %arg1: memref<1xi32, #tpu.memory_space<smem>>, %arg2: memref<1xi32, #tpu.memory_space<smem>>, %arg3: memref<1xi32, #tpu.memory_space<smem>>, %arg4: memref<1xi32, #tpu.memory_space<smem>>) -> (i32, i32) {
    %c0_i32 = arith.constant 0 : i32
    %c0_i32_0 = arith.constant 0 : i32
    %c0_i32_1 = arith.constant 0 : i32
    return %c0_i32, %c0_i32_0 : i32, i32
  }
  func.func @transform_2(%arg0: i32, %arg1: memref<1xi32, #tpu.memory_space<smem>>, %arg2: memref<1xi32, #tpu.memory_space<smem>>, %arg3: memref<1xi32, #tpu.memory_space<smem>>, %arg4: memref<1xi32, #tpu.memory_space<smem>>) -> (i32, i32) {
    %c0_i32 = arith.constant 0 : i32
    %c0_i32_0 = arith.constant 0 : i32
    %c0_i32_1 = arith.constant 0 : i32
    return %c0_i32, %c0_i32_0 : i32, i32
  }
  func.func @transform_3(%arg0: i32, %arg1: memref<1xi32, #tpu.memory_space<smem>>, %arg2: memref<1xi32, #tpu.memory_space<smem>>, %arg3: memref<1xi32, #tpu.memory_space<smem>>, %arg4: memref<1xi32, #tpu.memory_space<smem>>) -> (i32, i32) {
    %0 = arith.index_cast %arg0 : i32 to index
    %1 = memref.load %arg1[%0] : memref<1xi32, #tpu.memory_space<smem>>
    %c0_i32 = arith.constant 0 : i32
    %c0_i32_0 = arith.constant 0 : i32
    return %c0_i32, %1 : i32, i32
  }
  func.func @transform_4(%arg0: i32, %arg1: memref<1xi32, #tpu.memory_space<smem>>, %arg2: memref<1xi32, #tpu.memory_space<smem>>, %arg3: memref<1xi32, #tpu.memory_space<smem>>, %arg4: memref<1xi32, #tpu.memory_space<smem>>) -> (i32, i32) {
    %c0_i32 = arith.constant 0 : i32
    %c0_i32_0 = arith.constant 0 : i32
    %c0_i32_1 = arith.constant 0 : i32
    return %c0_i32, %c0_i32_0 : i32, i32
  }
  func.func @transform_5(%arg0: i32, %arg1: memref<1xi32, #tpu.memory_space<smem>>, %arg2: memref<1xi32, #tpu.memory_space<smem>>, %arg3: memref<1xi32, #tpu.memory_space<smem>>, %arg4: memref<1xi32, #tpu.memory_space<smem>>) -> (i32, i32) {
    %c0_i32 = arith.constant 0 : i32
    %c0_i32_0 = arith.constant 0 : i32
    %c0_i32_1 = arith.constant 0 : i32
    return %c0_i32, %c0_i32_0 : i32, i32
  }
  func.func @transform_6(%arg0: i32, %arg1: memref<1xi32, #tpu.memory_space<smem>>, %arg2: memref<1xi32, #tpu.memory_space<smem>>, %arg3: memref<1xi32, #tpu.memory_space<smem>>, %arg4: memref<1xi32, #tpu.memory_space<smem>>) -> (i32, i32) {
    %c0_i32 = arith.constant 0 : i32
    %c0_i32_0 = arith.constant 0 : i32
    %c0_i32_1 = arith.constant 0 : i32
    return %c0_i32, %c0_i32_0 : i32, i32
  }
}

</mosaic_0001>

<bundles_post_ra>
// kernel: tpu_custom_call.1
= control target key start
LH: loop header
LB: loop body
LE: loop exit
PB: predicated region body
PF: predicated region fallthrough
CT: control target
= control target key end

     0   :  { %s1290_s0 = inlined_call_operand.<no memory space> [shape: s32[1], index: 0, kind: input, shape index: {}]   ;;  %s1291_s1 = inlined_call_operand.<no memory space> [shape: s32[1], index: 1, kind: input, shape index: {}]   ;;  %s1292_s2 = inlined_call_operand.<no memory space> [shape: s32[1], index: 2, kind: input, shape index: {}]   ;;  %s1293_s3 = inlined_call_operand.<no memory space> [shape: s32[1], index: 3, kind: input, shape index: {}]   ;;  %s1294_s4 = inlined_call_operand.vmem [shape: f32[128,128], index: 4, kind: input, shape index: {}]   ;;  %s1295_s5 = inlined_call_operand.hbm [shape: f32[128,128], index: 5, kind: input, shape index: {}]   ;;  %s1296_s6 = inlined_call_operand.vmem [shape: f32[1,128], index: 6, kind: input, shape index: {}]   ;;  %s1297_s7 = inlined_call_operand.vmem [shape: f32[2,128], index: 7, kind: input, shape index: {}]   ;;  %s1298_s8 = inlined_call_operand.vmem [shape: f32[128,4], index: 8, kind: input, shape index: {}]   ;;  %s1299_s9 = inlined_call_operand.vmem [shape: f32[1,4], index: 9, kind: input, shape index: {}]   ;;  %s1300_s10 = inlined_call_operand.hbm [shape: f32[2,4], index: 10, kind: output, shape index: {}]  }
   0x1   :  { %16 = sst [smem:[#allocation6]] %s1291_s1 }
   0x2   :  { %18 = sst [smem:[#allocation8]] %s1293_s3 }
   0x3   :  { %19 = vsyncpa [#allocation10], 0 }
   0x4   :  { %20 = vsyncpa [#allocation11], 0  ;;  %s1013_s17 = smov [#allocation9]   ;;  %s965_s21 = scalar_lea.hbm %s1295_s5, 2048 }
   0x5   :  { %s41_s18 = sshll.u32 %s1013_s17, 4  ;;  %p966_p0 = scmp.ne.s32.totalorder %s1295_s5, %s965_s21  ;;  %s42_s18 = int_to_ptr.vmem [resolvable:$true] %s41_s18 }
   0x6   :  { %p969_p1 = scmp.lt.u32.totalorder %s965_s21, %s1295_s5 }
   0x8   :  { %p971_p2 = pnand %p969_p1, %p966_p0 }
   0xa   :  { %974 = shalt.err (!%p971_p2)
}
   0xb   :  { %s975_s1 = scalar_lea.vmem %s42_s18, 2048  ;;  %p980_p4 = scmp.lt.s32.totalorder %s42_s18, %s42_s18 }
   0xc   :  { %p976_p3 = scmp.ne.s32.totalorder %s42_s18, %s975_s1  ;;  %p981_p5 = scmp.lt.s32.totalorder %s975_s1, %s975_s1 }
   0xe   :  { %p982_p6 = por %p981_p5, %p980_p4 }
  0x10   :  { %p983_p7 = pnand %p982_p6, %p976_p3 }
  0x12   :  { %986 = shalt.err (!%p983_p7)
}
  0x13   :  { %s1014_s3 = smov 128   ;;  %s1015_s26 = smov 8  }
  0x14   :  { %47 = dma.hbm_to_vmem [thread:$0]  %s1295_s5, 2048, %s42_s18, [#allocation10], %s1014_s3, %s1014_s3, %s1015_s26  }
  0x15   :  { %1009 = dma.done.wait [#allocation10], 2048  }
  0x16   :  { %1010 = vsyncadd [#allocation10], 4294965248  ;;  %s654_s11 = sshll.u32 %s1290_s0, 4  ;;  %p94_p8 = scmp.lt.s32.totalorder %s1290_s0, 0  ;;  %v1016_v0 = vmov 0.0  }
  0x17   :  { %s81_s14 = sld [smem:[#allocation6]]  ;;  %p83_p9 = scmp.lt.s32.totalorder %s654_s11, 15  ;;  %103 = vst [vmem:[#allocation3] sm:$0x3] %v1016_v0 }
  0x18   :  { %s1304_s0 = smov (!%p94_p8, %s1290_s0), 0  ;;  %p657_p11 = scmp.ne.s32.totalorder %s1292_s2, 1 }
  0x19   :  { %s656_s5 = sshll.u32 %s1304_s0, 1  ;;  %s1306_s11 = smov (!%p83_p9, %s654_s11), 15  ;;  %v1017_v1 = vmov (!%p657_p11), 0.0  }
  0x1a   :  { %s1110_s19 = scalar_lea.vmem %s1297_s7, %s656_s5  ;;  %109 = vst [vmem:[#allocation2] sm:$0xff] (!%p657_p11), %v1017_v1  ;;  %110 = vst [vmem:[#allocation2 + $0x8] sm:$0xff] (!%p657_p11), %v1017_v1 }
  0x1b   :  { %111 = vst [vmem:[#allocation2 + $0x10] sm:$0xff] (!%p657_p11), %v1017_v1  ;;  %112 = vst [vmem:[#allocation2 + $0x18] sm:$0xff] (!%p657_p11), %v1017_v1 }
  0x1c   :  { %108 = sbr.rel (%p657_p11) target bundleno = 35 (0x23), region = 37  ;;  %113 = vst [vmem:[#allocation2 + $0x20] sm:$0xff] (!%p657_p11), %v1017_v1  ;;  %114 = vst [vmem:[#allocation2 + $0x28] sm:$0xff] (!%p657_p11), %v1017_v1 }
  0x1d   :  { %p85_p10 = scmp.lt.s32.totalorder %s81_s14, 0  ;;  %115 = vst [vmem:[#allocation2 + $0x30] sm:$0xff] (!%p657_p11), %v1017_v1  ;;  %116 = vst [vmem:[#allocation2 + $0x38] sm:$0xff] (!%p657_p11), %v1017_v1 }
  0x1e   :  { %117 = vst [vmem:[#allocation2 + $0x40] sm:$0xff] (!%p657_p11), %v1017_v1  ;;  %118 = vst [vmem:[#allocation2 + $0x48] sm:$0xff] (!%p657_p11), %v1017_v1 }
  0x1f   :  { %s1308_s14 = smov (!%p85_p10, %s81_s14), 0  ;;  %119 = vst [vmem:[#allocation2 + $0x50] sm:$0xff] (!%p657_p11), %v1017_v1  ;;  %120 = vst [vmem:[#allocation2 + $0x58] sm:$0xff] (!%p657_p11), %v1017_v1 }
  0x20   :  { %s87_s20 = sadd.s32 %s1308_s14, %s1306_s11  ;;  %121 = vst [vmem:[#allocation2 + $0x60] sm:$0xff] (!%p657_p11), %v1017_v1  ;;  %122 = vst [vmem:[#allocation2 + $0x68] sm:$0xff] (!%p657_p11), %v1017_v1 }
  0x21   :  { %s655_s21 = sshll.u32 %s87_s20, 3  ;;  %123 = vst [vmem:[#allocation2 + $0x70] sm:$0xff] (!%p657_p11), %v1017_v1  ;;  %124 = vst [vmem:[#allocation2 + $0x78] sm:$0xff] (!%p657_p11), %v1017_v1 }
  0x22   :  { %s1115_s24 = scalar_lea.vmem %s1294_s4, %s655_s21 }
  0x23 PF:  { %s125_s0 = sld [smem:[#allocation6]]  ;;  %v143_v2 = vld [vmem:[%s1115_s24] sm:$0xff]  ;;  %v144_v28 = vld [vmem:[%s1115_s24 + $0x8] sm:$0xff]  ;;  %v145_v30 = vld [vmem:[%s1115_s24 + $0x10] sm:$0xff] }
  0x24   :  { %v151_v3 = vld [vmem:[%s1115_s24 + $0x40] sm:$0xff]  ;;  %760 = vmatprep.mubr.f32.mxu0 %v143_v2  ;;  %v152_v29 = vld [vmem:[%s1115_s24 + $0x48] sm:$0xff]  ;;  %v153_v31 = vld [vmem:[%s1115_s24 + $0x50] sm:$0xff]  ;;  %s1154_s7 = sld [smem:[#allocation8]] }
  0x25   :  { %772 = vmatprep.mubr.f32.mxu1 %v151_v3  ;;  %v146_v32 = vld [vmem:[%s1115_s24 + $0x18] sm:$0xff]  ;;  %v147_v34 = vld [vmem:[%s1115_s24 + $0x20] sm:$0xff]  ;;  %v148_v36 = vld [vmem:[%s1115_s24 + $0x28] sm:$0xff] }
  0x26   :  { %v154_v33 = vld [vmem:[%s1115_s24 + $0x58] sm:$0xff]  ;;  %v155_v35 = vld [vmem:[%s1115_s24 + $0x60] sm:$0xff]  ;;  %v156_v37 = vld [vmem:[%s1115_s24 + $0x68] sm:$0xff] }
  0x27   :  { %v149_v38 = vld [vmem:[%s1115_s24 + $0x30] sm:$0xff]  ;;  %v150_v40 = vld [vmem:[%s1115_s24 + $0x38] sm:$0xff]  ;;  %v128_v42 = vld [vmem:[#allocation2 + $0x8] sm:$0xff] }
  0x28   :  { %v157_v39 = vld [vmem:[%s1115_s24 + $0x70] sm:$0xff]  ;;  %v158_v41 = vld [vmem:[%s1115_s24 + $0x78] sm:$0xff]  ;;  %v136_v43 = vld [vmem:[#allocation2 + $0x48] sm:$0xff] }
  0x29   :  { %s658_s2 = sshll.u32 %s125_s0, 7  ;;  %v127_v44 = vld [vmem:[#allocation2] sm:$0xff]  ;;  %v130_v54 = vld [vmem:[#allocation2 + $0x18] sm:$0xff]  ;;  %v129_v56 = vld [vmem:[#allocation2 + $0x10] sm:$0xff] }
  0x2a   :  { %s1122_s4 = scalar_lea.vmem [#allocation9], %s658_s2  ;;  %v135_v45 = vld [vmem:[#allocation2 + $0x40] sm:$0xff]  ;;  %v138_v55 = vld [vmem:[#allocation2 + $0x58] sm:$0xff]  ;;  %v137_v57 = vld [vmem:[#allocation2 + $0x50] sm:$0xff]  ;;  %p659_p12 = scmp.ne.s32.totalorder %s1154_s7, 1 }
  0x2b   :  { %v160_v4 = vld [vmem:[%s1122_s4] sm:$0xff]  ;;  %v161_v5 = vld [vmem:[%s1122_s4 + $0x8] sm:$0xff]  ;;  %v162_v6 = vld [vmem:[%s1122_s4 + $0x10] sm:$0xff]  ;;  %vm1019_vm0 = vmmov (!%p659_p12), 0  }
  0x2c   :  { %v854_v7 = vpack.c.bf16 %v161_v5, %v160_v4  ;;  %v163_v8 = vld [vmem:[%s1122_s4 + $0x18] sm:$0xff]  ;;  %v164_v10 = vld [vmem:[%s1122_s4 + $0x20] sm:$0xff]  ;;  %v165_v11 = vld [vmem:[%s1122_s4 + $0x28] sm:$0xff] }
  0x2d   :  { %v858_v9 = vpack.c.bf16 %v163_v8, %v162_v6  ;;  %v862_v12 = vpack.c.bf16 %v165_v11, %v164_v10  ;;  %v166_v13 = vld [vmem:[%s1122_s4 + $0x30] sm:$0xff]  ;;  %v167_v14 = vld [vmem:[%s1122_s4 + $0x38] sm:$0xff]  ;;  %v168_v16 = vld [vmem:[%s1122_s4 + $0x40] sm:$0xff] }
  0x2e   :  { %855 = vmatprep.subr.bf16.mxu0 %v854_v7  ;;  %934 = vmatprep.subr.bf16.mxu1 %v854_v7  ;;  %v866_v15 = vpack.c.bf16 %v167_v14, %v166_v13  ;;  %v169_v17 = vld [vmem:[%s1122_s4 + $0x48] sm:$0xff]  ;;  %v170_v19 = vld [vmem:[%s1122_s4 + $0x50] sm:$0xff]  ;;  %v171_v20 = vld [vmem:[%s1122_s4 + $0x58] sm:$0xff] }
  0x2f   :  { %857 = vmatpush3.bf16.msra.mxu0 %v854_v7  ;;  %942 = vmatpush3.bf16.msra.mxu1 %v854_v7  ;;  %v870_v18 = vpack.c.bf16 %v169_v17, %v168_v16  ;;  %v874_v21 = vpack.c.bf16 %v171_v20, %v170_v19  ;;  %v172_v22 = vld [vmem:[%s1122_s4 + $0x60] sm:$0xff]  ;;  %v173_v23 = vld [vmem:[%s1122_s4 + $0x68] sm:$0xff]  ;;  %v174_v25 = vld [vmem:[%s1122_s4 + $0x70] sm:$0xff] }
  0x30   :  { %859 = vmatprep.subr.bf16.mxu0 %v858_v9  ;;  %935 = vmatprep.subr.bf16.mxu1 %v858_v9  ;;  %v878_v24 = vpack.c.bf16 %v173_v23, %v172_v22  ;;  %v175_v26 = vld [vmem:[%s1122_s4 + $0x78] sm:$0xff]  ;;  %v132_v3 = vld [vmem:[#allocation2 + $0x28] sm:$0xff]  ;;  %v131_v5 = vld [vmem:[#allocation2 + $0x20] sm:$0xff] }
  0x31   :  { %v882_v27 = vpack.c.bf16 %v175_v26, %v174_v25  ;;  %v140_v4 = vld [vmem:[#allocation2 + $0x68] sm:$0xff]  ;;  %v139_v6 = vld [vmem:[#allocation2 + $0x60] sm:$0xff]  ;;  %v142_v16 = vld [vmem:[#allocation2 + $0x78] sm:$0xff] }
  0x32   :  { %v133_v17 = vld [vmem:[#allocation2 + $0x30] sm:$0xff] }
  0x33   :  { %861 = vmatpush3.bf16.msra.mxu0 %v858_v9  ;;  %943 = vmatpush3.bf16.msra.mxu1 %v858_v9 }
  0x34   :  { %863 = vmatprep.subr.bf16.mxu0 %v862_v12  ;;  %936 = vmatprep.subr.bf16.mxu1 %v862_v12 }
  0x37   :  { %865 = vmatpush3.bf16.msra.mxu0 %v862_v12  ;;  %944 = vmatpush3.bf16.msra.mxu1 %v862_v12 }
  0x38   :  { %867 = vmatprep.subr.bf16.mxu0 %v866_v15  ;;  %937 = vmatprep.subr.bf16.mxu1 %v866_v15 }
  0x3b   :  { %869 = vmatpush3.bf16.msra.mxu0 %v866_v15  ;;  %945 = vmatpush3.bf16.msra.mxu1 %v866_v15  ;;  %v134_v15 = vld [vmem:[#allocation2 + $0x38] sm:$0xff] }
  0x3c   :  { %871 = vmatprep.subr.bf16.mxu0 %v870_v18  ;;  %938 = vmatprep.subr.bf16.mxu1 %v870_v18 }
  0x3f   :  { %873 = vmatpush3.bf16.msra.mxu0 %v870_v18  ;;  %946 = vmatpush3.bf16.msra.mxu1 %v870_v18  ;;  %v141_v18 = vld [vmem:[#allocation2 + $0x70] sm:$0xff] }
  0x40   :  { %875 = vmatprep.subr.bf16.mxu0 %v874_v21  ;;  %939 = vmatprep.subr.bf16.mxu1 %v874_v21 }
  0x43   :  { %877 = vmatpush3.bf16.msra.mxu0 %v874_v21  ;;  %947 = vmatpush3.bf16.msra.mxu1 %v874_v21 }
  0x44   :  { %879 = vmatprep.subr.bf16.mxu0 %v878_v24  ;;  %940 = vmatprep.subr.bf16.mxu1 %v878_v24 }
  0x47   :  { %881 = vmatpush3.bf16.msra.mxu0 %v878_v24  ;;  %948 = vmatpush3.bf16.msra.mxu1 %v878_v24 }
  0x48   :  { %883 = vmatprep.subr.bf16.mxu0 %v882_v27  ;;  %941 = vmatprep.subr.bf16.mxu1 %v882_v27 }
  0x4b   :  { %885 = vmatpush3.bf16.msra.mxu0 %v882_v27  ;;  %949 = vmatpush3.bf16.msra.mxu1 %v882_v27 }
  0x4e   :  { %761 = vmatmul.mubr.f32.vlgmr.msra.gmra.mrb[0].mxu0 %v144_v28  ;;  %773 = vmatmul.mubr.f32.vlgmr.msra.gmra.mrb[0].mxu1 %v152_v29  ;;  %v1160_v29 = vld [vmem:[%s1296_s6] ss:$0 sm:$0xff] (!%p659_p12) }
  0x4f   :  { %763 = vmatprep.mubr.f32.mxu0 %v145_v30  ;;  %775 = vmatprep.mubr.f32.mxu1 %v153_v31  ;;  %v397_v30 = vlaneseq (!%p659_p12)  ;;  %v1018_v31 = vmov (!%p659_p12), 0.0|0.0  }
  0x50   :  { %886 = vmatprep.subr.bf16.mxu0 (!%p659_p12), %v1018_v31 }
  0x52   :  { %764 = vmatmul.mubr.f32.gmra.mrb[2].mxu0 %v146_v32  ;;  %776 = vmatmul.mubr.f32.gmra.mrb[2].mxu1 %v154_v33 }
  0x53   :  { %766 = vmatprep.mubr.f32.mxu0 %v147_v34  ;;  %778 = vmatprep.mubr.f32.mxu1 %v155_v35 }
  0x56   :  { %767 = vmatmul.mubr.f32.gmra.mrb[4].mxu0 %v148_v36  ;;  %779 = vmatmul.mubr.f32.gmra.mrb[4].mxu1 %v156_v37  ;;  %v398_v37 = vand.u32 (!%p659_p12), 127, %v397_v30 }
  0x57   :  { %769 = vmatprep.mubr.f32.mxu0 %v149_v38  ;;  %781 = vmatprep.mubr.f32.mxu1 %v157_v39 }
  0x58   :  { %vm399_vm1 = vcmp.lt.s32.totalorder (!%p659_p12), %v398_v37, 32  ;;  %vm400_vm2 = vcmp.ge.s32.totalorder (!%p659_p12), %v398_v37, 64  ;;  %vm401_vm3 = vcmp.lt.s32.totalorder (!%p659_p12), %v398_v37, 96 }
  0x59   :  { %vm402_vm4 = vmand (!%p659_p12), %vm400_vm2, %vm401_vm3 }
  0x5a   :  { %770 = vmatmul.mubr.f32.gmra.mrb[6].mxu0 %v150_v40  ;;  %782 = vmatmul.mubr.f32.gmra.mrb[6].mxu1 %v158_v41  ;;  %vm1169_vm5 = vmor (!%p659_p12), %vm399_vm1, %vm402_vm4 }
 0x121   :  { %v762_v46 = vpop.f32.mrb[0].mxu0  ;;  %v774_v47 = vpop.f32.mrb[0].mxu1 }
 0x122   :  { %v322_v48 = vadd.f32 %v762_v46, %v128_v42  ;;  %v330_v49 = vadd.f32 %v774_v47, %v136_v43  ;;  %v242_v50 = vpop.f32.mrb[1].mxu0  ;;  %v282_v51 = vpop.f32.mrb[1].mxu1  ;;  %v1020_v42 = vmov (!%p659_p12), 0.0  }
 0x123   :  { %v321_v52 = vadd.f32 %v242_v50, %v127_v44  ;;  %v329_v53 = vadd.f32 %v282_v51, %v135_v45  ;;  %816 = vmatprep.mubr.msk.f32.mxu0 (!%p659_p12), %vm1019_vm0, %v1020_v42 }
 0x124   :  { %338 = vst [vmem:[#allocation2 + $0x8] sm:$0xff] %v322_v48  ;;  %346 = vst [vmem:[#allocation2 + $0x48] sm:$0xff] %v330_v49 }
 0x125   :  { %337 = vst [vmem:[#allocation2] sm:$0xff] %v321_v52  ;;  %345 = vst [vmem:[#allocation2 + $0x40] sm:$0xff] %v329_v53  ;;  %v765_v58 = vpop.f32.mrb[2].mxu0  ;;  %v777_v59 = vpop.f32.mrb[2].mxu1 }
 0x126   :  { %v324_v60 = vadd.f32 %v765_v58, %v130_v54  ;;  %v332_v61 = vadd.f32 %v777_v59, %v138_v55  ;;  %v252_v62 = vpop.f32.mrb[3].mxu0  ;;  %v292_v63 = vpop.f32.mrb[3].mxu1 }
 0x127   :  { %v323_v1 = vadd.f32 %v252_v62, %v129_v56  ;;  %v331_v2 = vadd.f32 %v292_v63, %v137_v57 }
 0x128   :  { %340 = vst [vmem:[#allocation2 + $0x18] sm:$0xff] %v324_v60  ;;  %348 = vst [vmem:[#allocation2 + $0x58] sm:$0xff] %v332_v61 }
 0x129   :  { %339 = vst [vmem:[#allocation2 + $0x10] sm:$0xff] %v323_v1  ;;  %347 = vst [vmem:[#allocation2 + $0x50] sm:$0xff] %v331_v2  ;;  %v768_v7 = vpop.f32.mrb[4].mxu0  ;;  %v780_v8 = vpop.f32.mrb[4].mxu1 }
 0x12a   :  { %v326_v9 = vadd.f32 %v768_v7, %v132_v3  ;;  %v334_v10 = vadd.f32 %v780_v8, %v140_v4  ;;  %v262_v11 = vpop.f32.mrb[5].mxu0  ;;  %v302_v12 = vpop.f32.mrb[5].mxu1 }
 0x12b   :  { %v325_v13 = vadd.f32 %v262_v11, %v131_v5  ;;  %v333_v14 = vadd.f32 %v302_v12, %v139_v6  ;;  %357 = sbr.rel (%p659_p12) target bundleno = 554 (0x22a), region = 41  ;;  %v359_v28 = vld [vmem:[#allocation2 + $0x8] sm:$0xff] (!%p659_p12) }
 0x12c   :  { %342 = vst [vmem:[#allocation2 + $0x28] sm:$0xff] %v326_v9  ;;  %350 = vst [vmem:[#allocation2 + $0x68] sm:$0xff] %v334_v10  ;;  %v358_v27 = vld [vmem:[#allocation2] sm:$0xff] (!%p659_p12)  ;;  %v382_v33 = vadd.f32 (!%p659_p12), %v1160_v29, %v359_v28  ;;  %v367_v61 = vld [vmem:[#allocation2 + $0x48] sm:$0xff] (!%p659_p12) }
 0x12d   :  { %341 = vst [vmem:[#allocation2 + $0x20] sm:$0xff] %v325_v13  ;;  %349 = vst [vmem:[#allocation2 + $0x60] sm:$0xff] %v333_v14  ;;  %v771_v19 = vpop.f32.mrb[6].mxu0  ;;  %v783_v20 = vpop.f32.mrb[6].mxu1  ;;  %v381_v32 = vadd.f32 (!%p659_p12), %v1160_v29, %v358_v27  ;;  %v366_v59 = vld [vmem:[#allocation2 + $0x40] sm:$0xff] (!%p659_p12)  ;;  %v390_v5 = vadd.f32 (!%p659_p12), %v1160_v29, %v367_v61 }
 0x12e   :  { %v328_v21 = vadd.f32 %v771_v19, %v134_v15  ;;  %v336_v22 = vadd.f32 %v783_v20, %v142_v16  ;;  %v272_v23 = vpop.f32.mrb[7].mxu0  ;;  %v312_v24 = vpop.f32.mrb[7].mxu1  ;;  %v405_v44 = vmax.f32 (!%p659_p12), %v382_v33, 0.0  ;;  %v389_v1 = vadd.f32 (!%p659_p12), %v1160_v29, %v366_v59 }
 0x12f   :  { %v327_v25 = vadd.f32 %v272_v23, %v133_v17  ;;  %v335_v26 = vadd.f32 %v312_v24, %v141_v18  ;;  %v361_v35 = vld [vmem:[#allocation2 + $0x18] sm:$0xff] (!%p659_p12)  ;;  %v404_v43 = vmax.f32 (!%p659_p12), %v381_v32, 0.0  ;;  %v413_v13 = vmax.f32 (!%p659_p12), %v390_v5, 0.0 }
 0x130   :  { %344 = vst [vmem:[#allocation2 + $0x38] sm:$0xff] %v328_v21  ;;  %352 = vst [vmem:[#allocation2 + $0x78] sm:$0xff] %v336_v22  ;;  %v360_v34 = vld [vmem:[#allocation2 + $0x10] sm:$0xff] (!%p659_p12)  ;;  %v384_v39 = vadd.f32 (!%p659_p12), %v1160_v29, %v361_v35  ;;  %v421_v56 = vsel (!%p659_p12), %vm1169_vm5, %v405_v44, %v382_v33  ;;  %v369_v7 = vld [vmem:[#allocation2 + $0x58] sm:$0xff] (!%p659_p12)  ;;  %v412_v12 = vmax.f32 (!%p659_p12), %v389_v1, 0.0 }
 0x131   :  { %343 = vst [vmem:[#allocation2 + $0x30] sm:$0xff] %v327_v25  ;;  %351 = vst [vmem:[#allocation2 + $0x70] sm:$0xff] %v335_v26  ;;  %v383_v38 = vadd.f32 (!%p659_p12), %v1160_v29, %v360_v34  ;;  %v420_v55 = vsel (!%p659_p12), %vm1169_vm5, %v404_v43, %v381_v32  ;;  %v368_v6 = vld [vmem:[#allocation2 + $0x50] sm:$0xff] (!%p659_p12)  ;;  %v392_v14 = vadd.f32 (!%p659_p12), %v1160_v29, %v369_v7  ;;  %v437_v43 = vld [vmem:[%s1110_s19] sm:$0x3] (!%p659_p12) }
 0x132   :  { %v407_v49 = vmax.f32 %v384_v39, 0.0  ;;  %v887_v60 = vpack.c.bf16 %v421_v56, %v420_v55  ;;  %v391_v10 = vadd.f32 %v1160_v29, %v368_v6  ;;  %v428_v20 = vsel %vm1169_vm5, %v412_v12, %v389_v1  ;;  %v436_v44 = vld [vmem:[#allocation3] sm:$0x3] }
 0x133   :  { %v363_v40 = vld [vmem:[#allocation2 + $0x28] sm:$0xff]  ;;  %v406_v48 = vmax.f32 %v383_v38, 0.0  ;;  %v429_v21 = vsel %vm1169_vm5, %v413_v13, %v390_v5  ;;  %v415_v22 = vmax.f32 %v392_v14, 0.0 }
 0x134   :  { %v362_v36 = vld [vmem:[#allocation2 + $0x20] sm:$0xff]  ;;  %v386_v45 = vadd.f32 %v1160_v29, %v363_v40  ;;  %v423_v58 = vsel %vm1169_vm5, %v407_v49, %v384_v39  ;;  %888 = vmatpush3.bf16.msra.mxu0 %v887_v60  ;;  %v371_v16 = vld [vmem:[#allocation2 + $0x68] sm:$0xff]  ;;  %v414_v18 = vmax.f32 %v391_v10, 0.0  ;;  %v899_v26 = vpack.c.bf16 %v429_v21, %v428_v20 }
 0x135   :  { %v385_v41 = vadd.f32 %v1160_v29, %v362_v36  ;;  %v422_v57 = vsel %vm1169_vm5, %v406_v48, %v383_v38  ;;  %889 = vmatprep.subr.bf16.mxu0 %v1018_v31  ;;  %v370_v15 = vld [vmem:[#allocation2 + $0x60] sm:$0xff]  ;;  %v394_v23 = vadd.f32 %v1160_v29, %v371_v16  ;;  %v431_v30 = vsel %vm1169_vm5, %v415_v22, %v392_v14 }
 0x136   :  { %v409_v52 = vmax.f32 %v386_v45, 0.0  ;;  %v890_v62 = vpack.c.bf16 %v423_v58, %v422_v57  ;;  %v393_v19 = vadd.f32 %v1160_v29, %v370_v15  ;;  %v430_v27 = vsel %vm1169_vm5, %v414_v18, %v391_v10 }
 0x137   :  { %v365_v47 = vld [vmem:[#allocation2 + $0x38] sm:$0xff]  ;;  %v408_v51 = vmax.f32 %v385_v41, 0.0  ;;  %v417_v33 = vmax.f32 %v394_v23, 0.0  ;;  %v902_v35 = vpack.c.bf16 %v431_v30, %v430_v27 }
 0x138   :  { %v364_v46 = vld [vmem:[#allocation2 + $0x30] sm:$0xff]  ;;  %v388_v54 = vadd.f32 %v1160_v29, %v365_v47  ;;  %v425_v3 = vsel %vm1169_vm5, %v409_v52, %v386_v45  ;;  %891 = vmatpush3.bf16.msra.mxu0 %v890_v62  ;;  %v373_v25 = vld [vmem:[#allocation2 + $0x78] sm:$0xff]  ;;  %v416_v32 = vmax.f32 %v393_v19, 0.0 }
 0x139   :  { %v387_v53 = vadd.f32 %v1160_v29, %v364_v46  ;;  %v424_v2 = vsel %vm1169_vm5, %v408_v51, %v385_v41  ;;  %892 = vmatprep.subr.bf16.mxu0 %v1018_v31  ;;  %v372_v24 = vld [vmem:[#allocation2 + $0x70] sm:$0xff]  ;;  %v396_v34 = vadd.f32 %v1160_v29, %v373_v25  ;;  %v433_v37 = vsel %vm1169_vm5, %v417_v33, %v394_v23 }
 0x13a   :  { %v411_v4 = vmax.f32 %v388_v54, 0.0  ;;  %v893_v8 = vpack.c.bf16 %v425_v3, %v424_v2  ;;  %v395_v28 = vadd.f32 %v1160_v29, %v372_v24  ;;  %v432_v36 = vsel %vm1169_vm5, %v416_v32, %v393_v19 }
 0x13b   :  { %v410_v63 = vmax.f32 %v387_v53, 0.0  ;;  %v419_v39 = vmax.f32 %v396_v34, 0.0  ;;  %v905_v40 = vpack.c.bf16 %v433_v37, %v432_v36 }
 0x13c   :  { %v427_v11 = vsel %vm1169_vm5, %v411_v4, %v388_v54  ;;  %894 = vmatpush3.bf16.msra.mxu0 %v893_v8  ;;  %v418_v38 = vmax.f32 %v395_v28, 0.0 }
 0x13d   :  { %v426_v9 = vsel %vm1169_vm5, %v410_v63, %v387_v53  ;;  %895 = vmatprep.subr.bf16.mxu0 %v1018_v31  ;;  %v435_v41 = vsel %vm1169_vm5, %v419_v39, %v396_v34 }
 0x13e   :  { %v896_v17 = vpack.c.bf16 %v427_v11, %v426_v9  ;;  %v434_v29 = vsel %vm1169_vm5, %v418_v38, %v395_v28 }
 0x13f   :  { %v908_v42 = vpack.c.bf16 %v435_v41, %v434_v29 }
 0x140   :  { %897 = vmatpush3.bf16.msra.mxu0 %v896_v17 }
 0x141   :  { %898 = vmatprep.subr.bf16.mxu0 %v1018_v31 }
 0x144   :  { %900 = vmatpush3.bf16.msra.mxu0 %v899_v26 }
 0x145   :  { %901 = vmatprep.subr.bf16.mxu0 %v1018_v31 }
 0x148   :  { %903 = vmatpush3.bf16.msra.mxu0 %v902_v35 }
 0x149   :  { %904 = vmatprep.subr.bf16.mxu0 %v1018_v31 }
 0x14c   :  { %906 = vmatpush3.bf16.msra.mxu0 %v905_v40 }
 0x14d   :  { %907 = vmatprep.subr.bf16.mxu0 %v1018_v31 }
 0x150   :  { %909 = vmatpush3.bf16.msra.mxu0 %v908_v42 }
 0x153   :  { %817 = vmatmul.mubr.f32.vlgmr.msra.gmra.mrb[0].mxu0 %v437_v43 }
 0x226   :  { %v504_v45 = vpop.f32.mrb[0].mxu0 }
 0x227   :  { %v508_v46 = vadd.f32 %v504_v45, %v436_v44  ;;  %v818_v47 = vpop.f32.mrb[1].mxu0 }
 0x229   :  { %509 = vst [vmem:[#allocation3] sm:$0x3] %v508_v46 }
 0x22a PF:  { %v514_v48 = vld [vmem:[%s1298_s8] sm:$0xff]  ;;  %v515_v49 = vld [vmem:[%s1298_s8 + $0x8] sm:$0xff]  ;;  %v516_v31 = vld [vmem:[%s1298_s8 + $0x10] sm:$0xff]  ;;  %v1021_v50 = vmov 0.0|0.0   ;;  %vm1022_vm6 = vmmov 0   ;;  %vm607_vm7 = vcmask 25600  }
 0x22b   :  { %910 = vmatprep.subr.bf16.mxu0 %v1021_v50  ;;  %v911_v51 = vpack.c.bf16 %v515_v49, %v514_v48  ;;  %v517_v52 = vld [vmem:[%s1298_s8 + $0x18] sm:$0xff]  ;;  %851 = vmatprep.mubr.msk.f32.mxu0 %vm1022_vm6, %v1016_v0  ;;  %v518_v54 = vld [vmem:[%s1298_s8 + $0x20] sm:$0xff]  ;;  %v519_v55 = vld [vmem:[%s1298_s8 + $0x28] sm:$0xff] }
 0x22c   :  { %v914_v53 = vpack.c.bf16 %v517_v52, %v516_v31  ;;  %v917_v56 = vpack.c.bf16 %v519_v55, %v518_v54  ;;  %v520_v57 = vld [vmem:[%s1298_s8 + $0x30] sm:$0xff]  ;;  %v521_v0 = vld [vmem:[%s1298_s8 + $0x38] sm:$0xff]  ;;  %v522_v59 = vld [vmem:[%s1298_s8 + $0x40] sm:$0xff] }
 0x22d   :  { %912 = vmatpush3.bf16.msra.mxu0 %v911_v51  ;;  %v920_v58 = vpack.c.bf16 %v521_v0, %v520_v57  ;;  %v523_v60 = vld [vmem:[%s1298_s8 + $0x48] sm:$0xff]  ;;  %v524_v62 = vld [vmem:[%s1298_s8 + $0x50] sm:$0xff]  ;;  %v525_v63 = vld [vmem:[%s1298_s8 + $0x58] sm:$0xff] }
 0x22e   :  { %913 = vmatprep.subr.bf16.mxu0 %v1021_v50  ;;  %v923_v61 = vpack.c.bf16 %v523_v60, %v522_v59  ;;  %v926_v1 = vpack.c.bf16 %v525_v63, %v524_v62  ;;  %v526_v2 = vld [vmem:[%s1298_s8 + $0x60] sm:$0xff]  ;;  %v527_v3 = vld [vmem:[%s1298_s8 + $0x68] sm:$0xff]  ;;  %v528_v5 = vld [vmem:[%s1298_s8 + $0x70] sm:$0xff] }
 0x22f   :  { %v929_v4 = vpack.c.bf16 %v527_v3, %v526_v2  ;;  %v529_v6 = vld [vmem:[%s1298_s8 + $0x78] sm:$0xff]  ;;  %v661_v9 = vld [vmem:[%s1299_s9] ss:$0 sm:$0xff]  ;;  %s1023_s8 = smov [#allocation12]  }
 0x230   :  { %v932_v7 = vpack.c.bf16 %v529_v6, %v528_v5  ;;  %v513_v8 = vld [vmem:[#allocation3] sm:$0x3]  ;;  %s628_s9 = sshll.u32 %s1023_s8, 4  ;;  %s629_s9 = int_to_ptr.vmem [resolvable:$true] %s628_s9 }
 0x231   :  { %915 = vmatpush3.bf16.msra.mxu0 %v914_v53  ;;  %s987_s12 = scalar_lea.vmem %s629_s9, 32  ;;  %p992_p0 = scmp.lt.s32.totalorder %s629_s9, %s629_s9 }
 0x232   :  { %916 = vmatprep.subr.bf16.mxu0 %v1021_v50  ;;  %p988_p13 = scmp.ne.s32.totalorder %s629_s9, %s987_s12  ;;  %p993_p1 = scmp.lt.s32.totalorder %s987_s12, %s987_s12 }
 0x234   :  { %p994_p2 = por %p993_p1, %p992_p0 }
 0x235   :  { %918 = vmatpush3.bf16.msra.mxu0 %v917_v56 }
 0x236   :  { %919 = vmatprep.subr.bf16.mxu0 %v1021_v50  ;;  %p995_p3 = pnand %p994_p2, %p988_p13 }
 0x239   :  { %921 = vmatpush3.bf16.msra.mxu0 %v920_v58 }
 0x23a   :  { %922 = vmatprep.subr.bf16.mxu0 %v1021_v50 }
 0x23d   :  { %924 = vmatpush3.bf16.msra.mxu0 %v923_v61 }
 0x23e   :  { %925 = vmatprep.subr.bf16.mxu0 %v1021_v50 }
 0x241   :  { %927 = vmatpush3.bf16.msra.mxu0 %v926_v1 }
 0x242   :  { %928 = vmatprep.subr.bf16.mxu0 %v1021_v50 }
 0x245   :  { %930 = vmatpush3.bf16.msra.mxu0 %v929_v4 }
 0x246   :  { %931 = vmatprep.subr.bf16.mxu0 %v1021_v50 }
 0x249   :  { %933 = vmatpush3.bf16.msra.mxu0 %v932_v7 }
 0x24c   :  { %852 = vmatmul.mubr.f32.vlgmr.msra.gmra.mrb[0].mxu0 %v513_v8 }
 0x31f   :  { %v603_v10 = vpop.f32.mrb[0].mxu0 }
 0x320   :  { %v604_v11 = vadd.f32 %v661_v9, %v603_v10  ;;  %v853_v12 = vpop.f32.mrb[1].mxu0 }
 0x322   :  { %v608_v13 = vsel %vm607_vm7, %v604_v11, -inf }
 0x323   :  { %609 = vmax.xlane.f32.xlu0 %v608_v13 }
 0x3b0   :  { %v610_v14 = vpop.xlane.xlu0 %609 }
 0x3b1   :  { %v611_v15 = vsub.f32 %v604_v11, %v610_v14 }
 0x3b3   :  { %v612_v16 = vmul.f32 1.442695, %v611_v15 }
 0x3b5   :  { %961 = vpow2.f32 %v612_v16 }
 0x3bf   :  { %v962_v17 = vpop.eup %961 }
 0x3c0   :  { %v614_v18 = vsel %vm607_vm7, %v962_v17, 0.0 }
 0x3c1   :  { %615 = vadd.xlane.f32.xlu0 %v614_v18 }
 0x44e   :  { %v616_v19 = vpop.xlane.xlu0 %615 }
 0x44f   :  { %963 = vlog2.f32 %v616_v19 }
 0x459   :  { %v964_v20 = vpop.eup %963 }
 0x45a   :  { %v618_v21 = vmul.f32 0.6931472, %v964_v20 }
 0x45c   :  { %v619_v22 = vadd.f32 %v618_v21, %v610_v14 }
 0x45e   :  { %v620_v23 = vsub.f32 %v604_v11, %v619_v22 }
 0x460   :  { %621 = vst.msk [vmem:[#allocation12] sm:$0x3] %vm607_vm7, %v620_v23 }
 0x461   :  { %998 = shalt.err (!%p995_p3)
}
 0x462   :  { %s999_s15 = scalar_lea.hbm %s1300_s10, 32 }
 0x463   :  { %p1000_p4 = scmp.ne.s32.totalorder %s1300_s10, %s999_s15  ;;  %p1003_p5 = scmp.lt.u32.totalorder %s999_s15, %s1300_s10 }
 0x465   :  { %p1005_p6 = pnand %p1003_p5, %p1000_p4 }
 0x467   :  { %1008 = shalt.err (!%p1005_p6)
}
 0x468   :  { %631 = dma.vmem_to_hbm [thread:$0]  %s629_s9, 32, %s1300_s10, [#allocation11]  }
 0x469   :  { %1011 = dma.done.wait [#allocation11], 32  }
 0x46a   :  { %1012 = vsyncadd [#allocation11], 4294967264 }
 0x46b   :  { %635 = vsyncpa [#allocation10], 1 }
 0x46c   :  { %636 = vsyncpa [#allocation11], 1 }

</bundles_post_ra>
